<compile_context>
chip_gen: v5e
topology: v5e:2x2
jax: 0.10.0
libtpu: 0.0.40
codegen_flags: <defaults>
</compile_context>

<pallas_src>
import functools

import jax
import jax.numpy as jnp
from jax.experimental import pallas as pl
from jax.experimental.pallas import tpu as pltpu

_EPS = 1e-5
_VMEM_BUDGET = 48 * 1024 * 1024   # routing budget; leaves headroom on v7x (64 MiB)


def _round_up(x, m):
    return ((x + m - 1) // m) * m


def _tile_candidates(total, cap):
    """128-multiple divisors of `total` (itself a 128-multiple), descending, <= cap."""
    cap = max(128, min(cap, total))
    cands = [t for t in range(128, cap + 1, 128) if total % t == 0]
    return sorted(cands or [128], reverse=True)


def _bn_finalize(y, g, beta, out_dtype):
    # Batch mean / biased variance over axis 0.  B is static, so 1/B folds into
    # a compile-time constant; axis-0 reductions are XLU work and the rsqrt
    # goes to the EUP — both off the weight-DMA critical path.
    mean = jnp.mean(y, axis=0, keepdims=True)
    diff = y - mean
    var = jnp.mean(diff * diff, axis=0, keepdims=True)
    scale = g * jax.lax.rsqrt(var + _EPS)          # fold gamma into inv_std
    return (diff * scale + beta).astype(out_dtype)


def _collapsed_kernel(x_ref, wt_ref, g_ref, b_ref, o_ref):
    # x_ref: (B, din_p) resident; wt_ref: (din_p, tn); g/b: (1, tn); o: (B, tn)
    y = jnp.dot(x_ref[...], wt_ref[...], preferred_element_type=jnp.float32)
    o_ref[...] = _bn_finalize(y, g_ref[...], b_ref[...], o_ref.dtype)


def _ktiled_kernel(x_ref, wt_ref, g_ref, b_ref, o_ref, acc_ref):
    # x_ref: (B, tk); wt_ref: (tk, tn); acc_ref: (B, tn) f32, resident over K.
    k = pl.program_id(1)

    @pl.when(k == 0)
    def _():
        acc_ref[...] = jnp.zeros_like(acc_ref)

    acc_ref[...] += jnp.dot(x_ref[...], wt_ref[...],
                            preferred_element_type=jnp.float32)

    @pl.when(k == pl.num_programs(1) - 1)
    def _():
        o_ref[...] = _bn_finalize(acc_ref[...], g_ref[...], b_ref[...],
                                  o_ref.dtype)


@functools.partial(jax.jit, static_argnames=("tn", "tk", "force_k_tiling"))
def ignore_linear(t, x, weight, bias, gamma, beta, *,
                  tn=None, tk=None, force_k_tiling=False):
    """IgnoreLinear forward.  t is ignored; x: (B, Din); weight: (Dout, Din)."""
    del t      # ignored, as in the PyTorch module
    del bias   # exactly cancelled by training-mode BatchNorm's mean subtraction

    B, Din = x.shape
    Dout = weight.shape[0]
    x_bytes = x.dtype.itemsize
    w_bytes = weight.dtype.itemsize

    if tn is not None and tn % 128:
        raise ValueError("tn must be a multiple of 128")
    if tk is not None and tk % 128:
        raise ValueError("tk must be a multiple of 128")

    dout_p = _round_up(Dout, tn or 128)
    din_p = _round_up(Din, tk or 128)

    # Feature tile: once dout_p >= 256 keep >= 2 tiles so the "parallel" axis
    # can feed both v7x TensorCores.
    if tn is None:
        tn_cap = 512 if dout_p < 256 else min(512, dout_p // 2)
        tn = _tile_candidates(dout_p, tn_cap)[0]

    # Weight -> (Din, Dout): native (K, N) layout for the MXU (no per-tile XLU
    # transpose).  Pad only when the model is actually ragged.
    wt = weight.T
    if din_p != Din or dout_p != Dout:
        wt = jnp.pad(wt, ((0, din_p - Din), (0, dout_p - Dout)))
    if din_p != Din:
        x = jnp.pad(x, ((0, 0), (0, din_p - Din)))
    g2 = gamma.reshape(1, Dout)
    be2 = beta.reshape(1, Dout)
    if dout_p != Dout:
        # Zero-padded gamma/beta keep padded output columns finite (exactly 0).
        g2 = jnp.pad(g2, ((0, 0), (0, dout_p - Dout)))
        be2 = jnp.pad(be2, ((0, 0), (0, dout_p - Dout)))

    # --- Path selection: collapse K whenever the full-K working set fits. ---
    small = 4 * tn * 4 * 2                         # gamma/beta tiles (tiny)
    collapsed_est = (2 * B * din_p * x_bytes       # x block (resident)
                     + 2 * din_p * tn * w_bytes    # weight stripes (dbl-buf)
                     + 2 * B * tn * x_bytes        # output tiles
                     + small)
    use_collapsed = (not force_k_tiling) and collapsed_est <= _VMEM_BUDGET

    if use_collapsed:
        est = collapsed_est
        grid = (dout_p // tn,)
        in_specs = [
            pl.BlockSpec((B, din_p), lambda j: (0, 0)),    # x: fetched once
            pl.BlockSpec((din_p, tn), lambda j: (0, j)),   # weight stripe
            pl.BlockSpec((1, tn), lambda j: (0, j)),       # gamma
            pl.BlockSpec((1, tn), lambda j: (0, j)),       # beta
        ]
        out_specs = pl.BlockSpec((B, tn), lambda j: (0, j))
        scratch = []
        kernel = _collapsed_kernel
        semantics = ("parallel",)
    else:
        # K-tiled fallback: big tiles (per-grid-step overhead dominates at
        # small B); shrink tk first — never tn — to fit the VMEM budget.
        if tk is None:
            for cand in _tile_candidates(din_p, 1024):
                tk = cand
                est = (2 * B * tk * x_bytes + 2 * tk * tn * w_bytes
                       + 2 * B * tn * x_bytes + B * tn * 4 + small)
                if est <= _VMEM_BUDGET:
                    break
        est = (2 * B * tk * x_bytes + 2 * tk * tn * w_bytes
               + 2 * B * tn * x_bytes + B * tn * 4 + small)
        grid = (dout_p // tn, din_p // tk)                 # reduction axis last
        in_specs = [
            pl.BlockSpec((B, tk), lambda j, k: (0, k)),
            pl.BlockSpec((tk, tn), lambda j, k: (k, j)),
            pl.BlockSpec((1, tn), lambda j, k: (0, j)),
            pl.BlockSpec((1, tn), lambda j, k: (0, j)),
        ]
        out_specs = pl.BlockSpec((B, tn), lambda j, k: (0, j))
        scratch = [pltpu.VMEM((B, tn), jnp.float32)]
        kernel = _ktiled_kernel
        semantics = ("parallel", "arbitrary")

    # Raise v5e's 16 MiB scoped default when needed; never exceed v7x's 64 MiB.
    vmem_limit = int(min(max(int(est * 1.25) + (2 << 20), 32 << 20), 64 << 20))

    out = pl.pallas_call(
        kernel,
        out_shape=jax.ShapeDtypeStruct((B, dout_p), x.dtype),
        grid_spec=pltpu.PrefetchScalarGridSpec(
            num_scalar_prefetch=0,
            grid=grid,
            in_specs=in_specs,
            out_specs=out_specs,
            scratch_shapes=scratch,
        ),
        compiler_params=pltpu.CompilerParams(
            dimension_semantics=semantics,
            vmem_limit_bytes=vmem_limit),
    )(x, wt, g2, be2)

    if dout_p != Dout:
        out = out[:, :Dout]
    return out


def _reference(x, weight, bias, gamma, beta):
    # Pure-JAX reference: Linear (bias included) + training-mode BatchNorm1d.
    y = jnp.dot(x, weight.T, precision=jax.lax.Precision.HIGHEST) + bias
    m = jnp.mean(y, axis=0, keepdims=True)
    v = jnp.mean((y - m) ** 2, axis=0, keepdims=True)
    return (y - m) / jnp.sqrt(v + _EPS) * gamma + beta


if __name__ == "__main__":
    key = jax.random.PRNGKey(0)

    def make_case(k, batch, dim_in, dim_out):
        k_x, k_w, k_b, k_g, k_be = jax.random.split(k, 5)
        bound = 1.0 / (dim_in ** 0.5)        # PyTorch-style Linear init bounds
        x = jax.random.normal(k_x, (batch, dim_in), dtype=jnp.float32)
        w = jax.random.uniform(k_w, (dim_out, dim_in), minval=-bound,
                               maxval=bound, dtype=jnp.float32)
        b = jax.random.uniform(k_b, (dim_out,), minval=-bound, maxval=bound,
                               dtype=jnp.float32)
        g = 1.0 + 0.1 * jax.random.normal(k_g, (dim_out,), dtype=jnp.float32)
        be = 0.1 * jax.random.normal(k_be, (dim_out,), dtype=jnp.float32)
        return x, w, b, g, be

    k1, k2 = jax.random.split(key)
    t = jnp.float32(0.5)   # ignored by the module

    # Case 1: module-typical small shapes -> exercises the collapsed-K path.
    x, w, b, g, be = make_case(k1, batch=8, dim_in=32, dim_out=16)
    out = jax.block_until_ready(ignore_linear(t, x, w, b, g, be))
    ref = _reference(x, w, b, g, be)
    assert out.shape == ref.shape
    assert jnp.allclose(out, ref, atol=1e-4, rtol=1e-4), \
        float(jnp.max(jnp.abs(out - ref)))

    # Case 2: forces the K-tiled fallback (2 feature tiles x 3 K steps).
    x, w, b, g, be = make_case(k2, batch=16, dim_in=384, dim_out=256)
    out = jax.block_until_ready(
        ignore_linear(t, x, w, b, g, be, tn=128, tk=128, force_k_tiling=True))
    ref = _reference(x, w, b, g, be)
    assert out.shape == ref.shape
    assert jnp.allclose(out, ref, atol=1e-3, rtol=1e-3), \
        float(jnp.max(jnp.abs(out - ref)))

    print("KERNEL_OK")
</pallas_src>

<mosaic_0001>
module attributes {stable_mosaic.version = 11 : i64} {
  func.func @_collapsed_kernel(%arg0: i32, %arg1: memref<8x128xf32, #tpu.memory_space<vmem>>, %arg2: memref<128x128xf32, #tpu.memory_space<vmem>>, %arg3: memref<1x128xf32, #tpu.memory_space<vmem>>, %arg4: memref<1x128xf32, #tpu.memory_space<vmem>>, %arg5: memref<8x128xf32, #tpu.memory_space<vmem>>) attributes {dimension_semantics = [#tpu.dimension_semantics<parallel>], iteration_bounds = array<i64: 1>, scalar_prefetch = 0 : i64, scratch_operands = 0 : i64, tpu.core_type = #tpu.core_type<tc>, window_params = [{pipeline_mode = #tpu.pipeline_mode<synchronous>, transform_indices = @transform_0, window_bounds = array<i64: 8, 128>}, {transform_indices = @transform_1, window_bounds = array<i64: 128, 128>}, {transform_indices = @transform_2, window_bounds = array<i64: 1, 128>}, {transform_indices = @transform_3, window_bounds = array<i64: 1, 128>}, {transform_indices = @transform_4, window_bounds = array<i64: 8, 128>}]} {
    %c0 = arith.constant 0 : index
    %c0_0 = arith.constant 0 : index
    %0 = vector.load %arg1[%c0, %c0_0] : memref<8x128xf32, #tpu.memory_space<vmem>>, vector<8x128xf32>
    %c0_1 = arith.constant 0 : index
    %c0_2 = arith.constant 0 : index
    %1 = vector.load %arg2[%c0_1, %c0_2] : memref<128x128xf32, #tpu.memory_space<vmem>>, vector<128x128xf32>
    %cst = arith.constant dense<0.000000e+00> : vector<8x128xf32>
    %2 = tpu.matmul %0, %1, %cst {dimension_numbers = #tpu.dot_dimension_numbers<[1], [0], [0], [1], [0, 0, 1, 1], [], []>} : vector<8x128xf32>, vector<128x128xf32>, vector<8x128xf32> -> vector<8x128xf32>
    %c0_3 = arith.constant 0 : index
    %c0_4 = arith.constant 0 : index
    %3 = vector.load %arg3[%c0_3, %c0_4] : memref<1x128xf32, #tpu.memory_space<vmem>>, vector<1x128xf32>
    %c0_5 = arith.constant 0 : index
    %c0_6 = arith.constant 0 : index
    %4 = vector.load %arg4[%c0_5, %c0_6] : memref<1x128xf32, #tpu.memory_space<vmem>>, vector<1x128xf32>
    %cst_7 = arith.constant dense<0.000000e+00> : vector<128xf32>
    %5 = vector.multi_reduction <add>, %2, %cst_7 [0] : vector<8x128xf32> to vector<128xf32>
    %6 = vector.shape_cast %5 : vector<128xf32> to vector<1x128xf32>
    %cst_8 = arith.constant 8.000000e+00 : f32
    %7 = vector.broadcast %cst_8 : f32 to vector<1x128xf32>
    %8 = arith.divf %6, %7 : vector<1x128xf32>
    %9 = vector.broadcast %8 : vector<1x128xf32> to vector<8x128xf32>
    %10 = arith.subf %2, %9 : vector<8x128xf32>
    %11 = arith.mulf %10, %10 : vector<8x128xf32>
    %cst_9 = arith.constant dense<0.000000e+00> : vector<128xf32>
    %12 = vector.multi_reduction <add>, %11, %cst_9 [0] : vector<8x128xf32> to vector<128xf32>
    %13 = vector.shape_cast %12 : vector<128xf32> to vector<1x128xf32>
    %cst_10 = arith.constant 8.000000e+00 : f32
    %14 = vector.broadcast %cst_10 : f32 to vector<1x128xf32>
    %15 = arith.divf %13, %14 : vector<1x128xf32>
    %cst_11 = arith.constant 9.99999974E-6 : f32
    %16 = vector.broadcast %cst_11 : f32 to vector<1x128xf32>
    %17 = arith.addf %15, %16 : vector<1x128xf32>
    %18 = math.rsqrt %17 : vector<1x128xf32>
    %19 = arith.mulf %3, %18 : vector<1x128xf32>
    %20 = vector.broadcast %19 : vector<1x128xf32> to vector<8x128xf32>
    %21 = arith.mulf %10, %20 : vector<8x128xf32>
    %22 = vector.broadcast %4 : vector<1x128xf32> to vector<8x128xf32>
    %23 = arith.addf %21, %22 : vector<8x128xf32>
    %c0_12 = arith.constant 0 : index
    %c0_13 = arith.constant 0 : index
    %24 = vector.load %arg5[%c0_12, %c0_13] : memref<8x128xf32, #tpu.memory_space<vmem>>, vector<8x128xf32>
    tpu.vector_store %arg5[%c0_12, %c0_13], %23 {strides = array<i32>} : memref<8x128xf32, #tpu.memory_space<vmem>>, vector<8x128xf32>,
    return
  }
  func.func @transform_0(%arg0: i32) -> (i32, i32) {
    %c0_i32 = arith.constant 0 : i32
    %c0_i32_0 = arith.constant 0 : i32
    %c0_i32_1 = arith.constant 0 : i32
    return %c0_i32, %c0_i32_0 : i32, i32
  }
  func.func @transform_1(%arg0: i32) -> (i32, i32) {
    %c0_i32 = arith.constant 0 : i32
    %c0_i32_0 = arith.constant 0 : i32
    return %c0_i32, %arg0 : i32, i32
  }
  func.func @transform_2(%arg0: i32) -> (i32, i32) {
    %c0_i32 = arith.constant 0 : i32
    %c0_i32_0 = arith.constant 0 : i32
    return %c0_i32, %arg0 : i32, i32
  }
  func.func @transform_3(%arg0: i32) -> (i32, i32) {
    %c0_i32 = arith.constant 0 : i32
    %c0_i32_0 = arith.constant 0 : i32
    return %c0_i32, %arg0 : i32, i32
  }
  func.func @transform_4(%arg0: i32) -> (i32, i32) {
    %c0_i32 = arith.constant 0 : i32
    %c0_i32_0 = arith.constant 0 : i32
    return %c0_i32, %arg0 : i32, i32
  }
}

</mosaic_0001>

<bundles_post_ra>
// kernel: ignore_linear.1
= control target key start
LH: loop header
LB: loop body
LE: loop exit
PB: predicated region body
PF: predicated region fallthrough
CT: control target
= control target key end

     0   :  { %s237_s0 = inlined_call_operand.vmem [shape: f32[8,128], index: 0, kind: input, shape index: {}]   ;;  %s238_s1 = inlined_call_operand.vmem [shape: f32[128,128], index: 1, kind: input, shape index: {}]   ;;  %s239_s2 = inlined_call_operand.vmem [shape: f32[1,128], index: 2, kind: input, shape index: {}]   ;;  %s240_s3 = inlined_call_operand.vmem [shape: f32[1,128], index: 3, kind: input, shape index: {}]   ;;  %s241_s4 = inlined_call_operand.hbm [shape: f32[8,128], index: 4, kind: output, shape index: {}]  }
   0x1   :  { %v34_v0 = vld [vmem:[%s238_s1 + $0x78] sm:$0xff]  ;;  %v33_v1 = vld [vmem:[%s238_s1 + $0x70] sm:$0xff]  ;;  %v32_v2 = vld [vmem:[%s238_s1 + $0x68] sm:$0xff] }
   0x2   :  { %35 = vmatpush.msra.mxu0 %v34_v0  ;;  %v31_v3 = vld [vmem:[%s238_s1 + $0x60] sm:$0xff] }
   0x4   :  { %36 = vmatpush.msra.mxu0 %v33_v1 }
   0x6   :  { %37 = vmatpush.msra.mxu0 %v32_v2 }
   0x7   :  { %9 = vsyncpa [#allocation3], 0  ;;  %v30_v4 = vld [vmem:[%s238_s1 + $0x58] sm:$0xff]  ;;  %v29_v5 = vld [vmem:[%s238_s1 + $0x50] sm:$0xff]  ;;  %v150_v17 = vmov 8.0   ;;  %s151_s25 = smov [#allocation2]  }
   0x8   :  { %38 = vmatpush.msra.mxu0 %v31_v3  ;;  %v28_v6 = vld [vmem:[%s238_s1 + $0x48] sm:$0xff]  ;;  %v27_v7 = vld [vmem:[%s238_s1 + $0x40] sm:$0xff]  ;;  %v26_v8 = vld [vmem:[%s238_s1 + $0x38] sm:$0xff]  ;;  %120 = vrcp.f32 %v150_v17  ;;  %s106_s26 = sshll.u32 %s151_s25, 4  ;;  %s108_s29 = sshll.u32 %s241_s4, 4  ;;  %s107_s26 = int_to_ptr.vmem [resolvable:$true] %s106_s26  ;;  %s109_s29 = int_to_ptr.hbm [resolvable:$true] %s108_s29 }
   0x9   :  { %v25_v9 = vld [vmem:[%s238_s1 + $0x30] sm:$0xff]  ;;  %v24_v10 = vld [vmem:[%s238_s1 + $0x28] sm:$0xff]  ;;  %v23_v11 = vld [vmem:[%s238_s1 + $0x20] sm:$0xff] }
   0xa   :  { %39 = vmatpush.msra.mxu0 %v30_v4  ;;  %v22_v12 = vld [vmem:[%s238_s1 + $0x18] sm:$0xff]  ;;  %v21_v13 = vld [vmem:[%s238_s1 + $0x10] sm:$0xff]  ;;  %v20_v14 = vld [vmem:[%s238_s1 + $0x8] sm:$0xff] }
   0xb   :  { %v19_v15 = vld [vmem:[%s238_s1] sm:$0xff] }
   0xc   :  { %40 = vmatpush.msra.mxu0 %v29_v5  ;;  %v18_v16 = vld [vmem:[%s237_s0] sm:$0xff] }
   0xd   :  { %v55_v47 = vld [vmem:[%s239_s2] sm:$0x1] }
   0xe   :  { %41 = vmatpush.msra.mxu0 %v28_v6  ;;  %v121_v18 = vpop.eup %120  ;;  %v119_v52 = vld [vmem:[%s240_s3] ss:$0 sm:$0xff] }
   0xf   :  { %v64_v19 = vmul.f32 8.0, %v121_v18  ;;  %vm68_vm0 = vweird.f32 %v121_v18 }
  0x10   :  { %42 = vmatpush.msra.mxu0 %v27_v7 }
  0x11   :  { %v65_v20 = vsub.f32 1.0, %v64_v19 }
  0x12   :  { %43 = vmatpush.msra.mxu0 %v26_v8 }
  0x13   :  { %v66_v23 = vmul.f32 %v121_v18, %v65_v20 }
  0x14   :  { %44 = vmatpush.msra.mxu0 %v25_v9 }
  0x15   :  { %v67_v26 = vadd.f32 %v121_v18, %v66_v23 }
  0x16   :  { %45 = vmatpush.msra.mxu0 %v24_v10 }
  0x17   :  { %v69_v29 = vsel %vm68_vm0, %v121_v18, %v67_v26 }
  0x18   :  { %46 = vmatpush.msra.mxu0 %v23_v11 }
  0x1a   :  { %47 = vmatpush.msra.mxu0 %v22_v12 }
  0x1c   :  { %48 = vmatpush.msra.mxu0 %v21_v13 }
  0x1e   :  { %49 = vmatpush.msra.mxu0 %v20_v14 }
  0x20   :  { %50 = vmatpush.msra.mxu0 %v19_v15 }
  0x21   :  { %51 = vmatmul.f32.vlgmr.msra.gmra.mxu0 %v18_v16 }
  0x9e   :  { %v52_v21 = vpop.f32.mrf.mxu0 }
  0x9f   :  { %v57_v22 = vrot.slane %v52_v21, 4 }
  0xa1   :  { %v58_v24 = vadd.f32 %v57_v22, %v52_v21 }
  0xa3   :  { %v59_v25 = vrot.slane %v58_v24, 2 }
  0xa5   :  { %v60_v27 = vadd.f32 %v59_v25, %v58_v24 }
  0xa7   :  { %v61_v28 = vrot.slane %v60_v27, 1 }
  0xa9   :  { %v62_v30 = vadd.f32 %v61_v28, %v60_v27 }
  0xab   :  { %v70_v31 = vmul.f32 %v69_v29, %v62_v30 }
  0xad   :  { %v71_v32 = vsub.f32 %v52_v21, %v70_v31 }
  0xaf   :  { %v72_v33 = vmul.f32 %v71_v32, %v71_v32 }
  0xb1   :  { %v73_v34 = vrot.slane %v72_v33, 4 }
  0xb3   :  { %v74_v35 = vadd.f32 %v73_v34, %v72_v33 }
  0xb5   :  { %v75_v36 = vrot.slane %v74_v35, 2 }
  0xb7   :  { %v76_v37 = vadd.f32 %v75_v36, %v74_v35 }
  0xb9   :  { %v77_v38 = vrot.slane %v76_v37, 1 }
  0xbb   :  { %v78_v39 = vadd.f32 %v77_v38, %v76_v37 }
  0xbd   :  { %v79_v40 = vmul.f32 %v78_v39, %v69_v29 }
  0xbf   :  { %v80_v41 = vadd.f32 1e-05, %v79_v40 }
  0xc1   :  { %122 = vrsqrt.f32 %v80_v41  ;;  %vm87_vm2 = vweird.f32 %v80_v41 }
  0xc7   :  { %v123_v42 = vpop.eup %122 }
  0xc8   :  { %v82_v43 = vmul.f32 %v123_v42, %v80_v41  ;;  %vm88_vm1 = vweird.f32 %v123_v42 }
  0xc9   :  { %vm89_vm3 = vmor %vm87_vm2, %vm88_vm1 }
  0xca   :  { %v83_v44 = vmul.f32 %v123_v42, %v82_v43 }
  0xcc   :  { %v84_v45 = vmul.f32 0.5, %v83_v44 }
  0xce   :  { %v85_v46 = vsub.f32 1.5, %v84_v45 }
  0xd0   :  { %v86_v48 = vmul.f32 %v123_v42, %v85_v46 }
  0xd2   :  { %v90_v49 = vsel %vm89_vm3, %v123_v42, %v86_v48 }
  0xd3   :  { %v91_v50 = vmul.f32 %v90_v49, %v55_v47 }
  0xd5   :  { %v93_v51 = vperm.slane %v91_v50, 0 }
  0xd7   :  { %v95_v53 = vmul.f32 %v93_v51, %v71_v32 }
  0xd9   :  { %v99_v54 = vadd.f32 %v119_v52, %v95_v53 }
  0xdb   :  { %100 = vst [vmem:[#allocation2] sm:$0xff] %v99_v54 }
  0xdc   :  { %111 = dma.vmem_to_hbm [thread:$0]  %s107_s26, 128, %s109_s29, [#allocation3]  }
  0xdd   :  { %148 = dma.done.wait [#allocation3], 128  }
  0xde   :  { %149 = vsyncadd [#allocation3], 4294967168 }
  0xdf   :  { %116 = vsyncpa [#allocation3], 1 }

</bundles_post_ra>
